<compile_context>
chip_gen: v7x
topology: tpu7x:2x2x1
jax: 0.10.0
libtpu: 0.0.40
codegen_flags: <defaults>
</compile_context>

<pallas_src>
import jax
import jax.numpy as jnp
from jax import lax
from jax.experimental import pallas as pl
from jax.experimental.pallas import tpu as pltpu

IGNORE_INDEX = -100


def _cdiv(a, b):
    return (a + b - 1) // b


def _round_up(a, b):
    return _cdiv(a, b) * b


def _block_bytes_per_token(num_classes, itemsize):
    """VMEM bytes per token column: double-buffered logits block, sublane-padded label
    and argmax blocks, plus ~6 live (C_pad, tile_n) f32/i32 intermediates."""
    c_pad = max(8, _round_up(num_classes, 8))
    return (c_pad * itemsize * 2     # logits input block, double-buffered
            + 8 * 4 * 2              # labels input block (padded to 8 sublanes), x2 buffers
            + 8 * 4 * 2              # argmax output block (padded to 8 sublanes), x2 buffers
            + 6 * c_pad * 4)         # live f32/i32 intermediates


def _choose_tile_n(n_tokens, num_classes, itemsize):
    """Lane-dense token tile (multiple of 128).  Big enough to amortize the ~0.35 us
    per-grid-step overhead (~1+ MB HBM per step), small enough to stay well inside the
    32 MiB scoped VMEM default even on v7x (64 MiB physical)."""
    bpt = _block_bytes_per_token(num_classes, itemsize)
    budget = 20 << 20                                   # ~20 MiB VMEM target
    tile = (budget // bpt) // 128 * 128
    tile = max(128, min(tile, 32768))                   # 32768 cap keeps v7x safe
    if n_tokens > 2048:
        # prefer >= 2 grid steps so the "parallel" axis can shard across both v7x TCs
        tile = min(tile, _round_up(_cdiv(n_tokens, 2), 128))
    return min(tile, _round_up(n_tokens, 128))


def _make_trainer_kernel(n_tokens, tile_n):
    def kernel(logits_ref, labels_ref, argmax_ref, nll_ref, cnt_ref):
        # logits_ref: (C, TN)  -- classes on sublanes, tokens on lanes
        # labels_ref: (1, TN)  int32
        logits = logits_ref[...].astype(jnp.float32)    # bf16 inputs upcast here
        labels = labels_ref[...]
        c, tn = logits.shape

        cls = lax.broadcasted_iota(jnp.int32, (c, tn), 0)   # class index per sublane

        # --- argmax over the class axis: predicted.max(2).indices ------------------
        col_max = jnp.max(logits, axis=0, keepdims=True)    # (1, TN)
        # first-occurrence tie-break (matches jnp.argmax; torch does not guarantee order)
        argmax_ref[...] = jnp.min(
            jnp.where(logits == col_max, cls, c), axis=0, keepdims=True
        ).astype(jnp.int32)

        # --- CrossEntropyLoss(ignore_index=-100), f32 math --------------------------
        shifted = logits - col_max                                        # (C, TN)
        lse = jnp.log(jnp.sum(jnp.exp(shifted), axis=0, keepdims=True))   # (1, TN)

        # token validity: ignore_index mask AND in-bounds mask for the ragged tail tile
        token_idx = (pl.program_id(0) * tile_n
                     + lax.broadcasted_iota(jnp.int32, (1, tn), 1))
        active = jnp.logical_and(labels != IGNORE_INDEX, token_idx < n_tokens)

        safe_labels = jnp.where(active, labels, 0)
        picked = jnp.sum(jnp.where(cls == safe_labels, shifted, 0.0),
                         axis=0, keepdims=True)                           # shifted[label]

        nll = jnp.where(active, lse - picked, 0.0)                        # (1, TN)

        # per-tile partial reductions; garbage lanes of the ragged tail are masked above
        nll_sum = jnp.sum(nll, axis=1, keepdims=True)                     # (1, 1)
        cnt_sum = jnp.sum(active.astype(jnp.float32), axis=1, keepdims=True)
        nll_ref[...] = jnp.broadcast_to(nll_sum, nll_ref.shape)
        cnt_ref[...] = jnp.broadcast_to(cnt_sum, cnt_ref.shape)

    return kernel


def general_trainer_step_transposed(logits_cn, labels_flat, *, tile_n=None, interpret=False):
    """Core fused kernel.  `logits_cn` is (C, N) (classes first), `labels_flat` is (N,).
    Returns (predictions (N,) int32, loss scalar f32)."""
    C, N = logits_cn.shape
    itemsize = jnp.dtype(logits_cn.dtype).itemsize
    if tile_n is None:
        tile_n = _choose_tile_n(N, C, itemsize)
    assert tile_n % 128 == 0, "tile_n must be a multiple of 128 (token/lane axis)"

    num_tiles = _cdiv(N, tile_n)
    labels_row = labels_flat.astype(jnp.int32).reshape(1, N)

    bpt = _block_bytes_per_token(C, itemsize)
    vmem_limit = min(32 << 20, max(8 << 20, int(tile_n * bpt * 1.5) + (2 << 20)))

    argmax_row, nll_parts, cnt_parts = pl.pallas_call(
        _make_trainer_kernel(N, tile_n),
        out_shape=(
            jax.ShapeDtypeStruct((1, N), jnp.int32),
            jax.ShapeDtypeStruct((1, num_tiles * 128), jnp.float32),
            jax.ShapeDtypeStruct((1, num_tiles * 128), jnp.float32),
        ),
        grid_spec=pltpu.PrefetchScalarGridSpec(
            num_scalar_prefetch=0,
            grid=(num_tiles,),
            in_specs=[
                pl.BlockSpec((C, tile_n), lambda i: (0, i)),
                pl.BlockSpec((1, tile_n), lambda i: (0, i)),
            ],
            out_specs=[
                pl.BlockSpec((1, tile_n), lambda i: (0, i)),
                pl.BlockSpec((1, 128), lambda i: (0, i)),
                pl.BlockSpec((1, 128), lambda i: (0, i)),
            ],
        ),
        compiler_params=pltpu.CompilerParams(
            # No cross-step state -> shardable across both TensorCores on v7x.
            dimension_semantics=("parallel",),
            vmem_limit_bytes=vmem_limit,
        ),
        interpret=interpret,
    )(logits_cn, labels_row)

    predictions = argmax_row[0]
    loss = jnp.sum(nll_parts[0, ::128]) / jnp.sum(cnt_parts[0, ::128])
    return predictions, loss


def general_trainer_step(logits, labels, *, tile_n=None, interpret=False):
    """Fused per-batch compute of GeneralTrainer.forward():
         predictions (B, S) int32  ==  predicted.max(2).indices
         loss scalar  f32          ==  CrossEntropyLoss(ignore_index=-100)(logits, labels)
       `logits` may be f32 or bf16 (kept in their HBM dtype; CE math runs in f32 in-kernel).
       Loss is NaN when no token is active (torch 'mean' reduction semantics)."""
    B, S, C = logits.shape
    N = B * S
    # TODO(synk): emitting the head logits already transposed as (C, B*S) upstream
    # (fused into the final projection) removes this extra HBM pass over the logits.
    logits_cn = logits.reshape(N, C).T
    labels_flat = labels.reshape(N).astype(jnp.int32)
    preds_flat, loss = general_trainer_step_transposed(
        logits_cn, labels_flat, tile_n=tile_n, interpret=interpret)
    return preds_flat.reshape(B, S), loss


def _reference(logits, labels):
    """Pure-JAX reference mirroring the torch semantics."""
    B, S, C = logits.shape
    preds = jnp.argmax(logits, axis=2).astype(jnp.int32)
    flat_logits = logits.reshape(-1, C).astype(jnp.float32)
    flat_labels = labels.reshape(-1)
    active = flat_labels != IGNORE_INDEX
    logp = jax.nn.log_softmax(flat_logits, axis=-1)
    safe = jnp.where(active, flat_labels, 0)
    picked = jnp.take_along_axis(logp, safe[:, None], axis=-1)[:, 0]
    loss = jnp.sum(jnp.where(active, -picked, 0.0)) / jnp.sum(active.astype(jnp.float32))
    return preds, loss


def _run_case(key, B, S, C, dtype=jnp.float32, tile_n=None):
    k_logits, k_labels, k_mask = jax.random.split(key, 3)
    predicted = jax.random.normal(k_logits, (B, S, C), dtype=jnp.float32).astype(dtype)
    class_labels = jax.random.randint(k_labels, (B, S), 0, C, dtype=jnp.int32)
    ignore_mask = jax.random.bernoulli(k_mask, 0.25, (B, S))
    class_labels = jnp.where(ignore_mask, IGNORE_INDEX, class_labels)

    preds, loss = general_trainer_step(predicted, class_labels, tile_n=tile_n)
    jax.block_until_ready((preds, loss))

    ref_preds, ref_loss = _reference(predicted, class_labels)
    assert jnp.array_equal(preds, ref_preds), f"argmax mismatch (B={B}, S={S}, C={C}, {dtype})"
    assert jnp.allclose(loss, ref_loss, rtol=1e-5, atol=1e-5), \
        f"loss mismatch (B={B}, S={S}, C={C}, {dtype}): {loss} vs {ref_loss}"


if __name__ == "__main__":
    key = jax.random.PRNGKey(0)
    k0, k1, k2, k3 = jax.random.split(key, 4)

    # Small shapes: batch=2, seq=8 token spans, num_classes=9 (typical NER tag set).
    _run_case(k0, B=2, S=8, C=9)

    # Multi-tile grid + ragged (unpadded) tail: N=140 -> 2 tiles of 128, last one partial.
    _run_case(k1, B=2, S=70, C=9, tile_n=128)

    # bf16 logits on the HBM side, non-multiple-of-8 class count, 3 tiles with ragged tail.
    _run_case(k2, B=2, S=150, C=13, dtype=jnp.bfloat16, tile_n=128)

    # Auto tile chooser path (N=4096 -> 2 balanced tiles, "parallel" axis shardable).
    _run_case(k3, B=8, S=512, C=9)

    print("KERNEL_OK")
</pallas_src>

<mosaic_0001>
module attributes {stable_mosaic.version = 11 : i64} {
  func.func @kernel(%arg0: i32, %arg1: memref<9x128xf32, #tpu.memory_space<vmem>>, %arg2: memref<1x128xi32, #tpu.memory_space<vmem>>, %arg3: memref<1x128xi32, #tpu.memory_space<vmem>>, %arg4: memref<1x128xf32, #tpu.memory_space<vmem>>, %arg5: memref<1x128xf32, #tpu.memory_space<vmem>>) attributes {dimension_semantics = [#tpu.dimension_semantics<parallel>], iteration_bounds = array<i64: 1>, scalar_prefetch = 0 : i64, scratch_operands = 0 : i64, tpu.core_type = #tpu.core_type<tc>, window_params = [{transform_indices = @transform_0, window_bounds = array<i64: 9, 128>}, {transform_indices = @transform_1, window_bounds = array<i64: 1, 128>}, {transform_indices = @transform_2, window_bounds = array<i64: 1, 128>}, {transform_indices = @transform_3, window_bounds = array<i64: 1, 128>}, {transform_indices = @transform_4, window_bounds = array<i64: 1, 128>}]} {
    %c0 = arith.constant 0 : index
    %c0_0 = arith.constant 0 : index
    %0 = vector.load %arg1[%c0, %c0_0] : memref<9x128xf32, #tpu.memory_space<vmem>>, vector<9x128xf32>
    %c0_1 = arith.constant 0 : index
    %c0_2 = arith.constant 0 : index
    %1 = vector.load %arg2[%c0_1, %c0_2] : memref<1x128xi32, #tpu.memory_space<vmem>>, vector<1x128xi32>
    %2 = tpu.iota {dimensions = array<i32: 0>} : vector<9x128xi32>
    %cst = arith.constant dense<0xFF800000> : vector<128xf32>
    %3 = vector.multi_reduction <maximumf>, %0, %cst [0] : vector<9x128xf32> to vector<128xf32>
    %4 = vector.shape_cast %3 : vector<128xf32> to vector<1x128xf32>
    %5 = vector.broadcast %4 : vector<1x128xf32> to vector<9x128xf32>
    %6 = arith.cmpf oeq, %0, %5 : vector<9x128xf32>
    %c9_i32 = arith.constant 9 : i32
    %7 = vector.broadcast %c9_i32 : i32 to vector<9x128xi32>
    %8 = arith.select %6, %2, %7 : vector<9x128xi1>, vector<9x128xi32>
    %cst_3 = arith.constant dense<2147483647> : vector<128xi32>
    %9 = vector.multi_reduction <minsi>, %8, %cst_3 [0] : vector<9x128xi32> to vector<128xi32>
    %10 = vector.shape_cast %9 : vector<128xi32> to vector<1x128xi32>
    %c0_4 = arith.constant 0 : index
    %c0_5 = arith.constant 0 : index
    %11 = vector.load %arg3[%c0_4, %c0_5] : memref<1x128xi32, #tpu.memory_space<vmem>>, vector<1x128xi32>
    tpu.vector_store %arg3[%c0_4, %c0_5], %10 {strides = array<i32>} : memref<1x128xi32, #tpu.memory_space<vmem>>, vector<1x128xi32>,
    %12 = vector.broadcast %4 : vector<1x128xf32> to vector<9x128xf32>
    %13 = arith.subf %0, %12 : vector<9x128xf32>
    %14 = math.exp %13 : vector<9x128xf32>
    %cst_6 = arith.constant dense<0.000000e+00> : vector<128xf32>
    %15 = vector.multi_reduction <add>, %14, %cst_6 [0] : vector<9x128xf32> to vector<128xf32>
    %16 = vector.shape_cast %15 : vector<128xf32> to vector<1x128xf32>
    %17 = math.log %16 : vector<1x128xf32>
    %c128_i32 = arith.constant 128 : i32
    %18 = arith.muli %arg0, %c128_i32 : i32
    %19 = tpu.iota {dimensions = array<i32: 1>} : vector<1x128xi32>
    %20 = vector.broadcast %18 : i32 to vector<1x128xi32>
    %21 = arith.addi %20, %19 : vector<1x128xi32>
    %c-100_i32 = arith.constant -100 : i32
    %22 = vector.broadcast %c-100_i32 : i32 to vector<1x128xi32>
    %23 = arith.cmpi ne, %1, %22 : vector<1x128xi32>
    %c16_i32 = arith.constant 16 : i32
    %24 = vector.broadcast %c16_i32 : i32 to vector<1x128xi32>
    %25 = arith.cmpi slt, %21, %24 : vector<1x128xi32>
    %26 = arith.andi %23, %25 : vector<1x128xi1>
    %c0_i32 = arith.constant 0 : i32
    %27 = vector.broadcast %c0_i32 : i32 to vector<1x128xi32>
    %28 = arith.select %26, %1, %27 : vector<1x128xi1>, vector<1x128xi32>
    %29 = vector.broadcast %28 : vector<1x128xi32> to vector<9x128xi32>
    %30 = arith.cmpi eq, %2, %29 : vector<9x128xi32>
    %cst_7 = arith.constant 0.000000e+00 : f32
    %31 = vector.broadcast %cst_7 : f32 to vector<9x128xf32>
    %32 = arith.select %30, %13, %31 : vector<9x128xi1>, vector<9x128xf32>
    %cst_8 = arith.constant dense<0.000000e+00> : vector<128xf32>
    %33 = vector.multi_reduction <add>, %32, %cst_8 [0] : vector<9x128xf32> to vector<128xf32>
    %34 = vector.shape_cast %33 : vector<128xf32> to vector<1x128xf32>
    %35 = arith.subf %17, %34 : vector<1x128xf32>
    %cst_9 = arith.constant 0.000000e+00 : f32
    %36 = vector.broadcast %cst_9 : f32 to vector<1x128xf32>
    %37 = arith.select %26, %35, %36 : vector<1x128xi1>, vector<1x128xf32>
    %cst_10 = arith.constant dense<0.000000e+00> : vector<1xf32>
    %38 = vector.multi_reduction <add>, %37, %cst_10 [1] : vector<1x128xf32> to vector<1xf32>
    %39 = vector.shape_cast %38 : vector<1xf32> to vector<1x1xf32>
    %40 = arith.extui %26 : vector<1x128xi1> to vector<1x128xi32>
    %41 = arith.sitofp %40 : vector<1x128xi32> to vector<1x128xf32>
    %cst_11 = arith.constant dense<0.000000e+00> : vector<1xf32>
    %42 = vector.multi_reduction <add>, %41, %cst_11 [1] : vector<1x128xf32> to vector<1xf32>
    %43 = vector.shape_cast %42 : vector<1xf32> to vector<1x1xf32>
    %44 = vector.shape_cast %39 : vector<1x1xf32> to vector<1x1xf32>
    %45 = vector.broadcast %44 : vector<1x1xf32> to vector<1x128xf32>
    %c0_12 = arith.constant 0 : index
    %c0_13 = arith.constant 0 : index
    %46 = vector.load %arg4[%c0_12, %c0_13] : memref<1x128xf32, #tpu.memory_space<vmem>>, vector<1x128xf32>
    tpu.vector_store %arg4[%c0_12, %c0_13], %45 {strides = array<i32>} : memref<1x128xf32, #tpu.memory_space<vmem>>, vector<1x128xf32>,
    %47 = vector.shape_cast %43 : vector<1x1xf32> to vector<1x1xf32>
    %48 = vector.broadcast %47 : vector<1x1xf32> to vector<1x128xf32>
    %c0_14 = arith.constant 0 : index
    %c0_15 = arith.constant 0 : index
    %49 = vector.load %arg5[%c0_14, %c0_15] : memref<1x128xf32, #tpu.memory_space<vmem>>, vector<1x128xf32>
    tpu.vector_store %arg5[%c0_14, %c0_15], %48 {strides = array<i32>} : memref<1x128xf32, #tpu.memory_space<vmem>>, vector<1x128xf32>,
    return
  }
  func.func @transform_0(%arg0: i32) -> (i32, i32) {
    %c0_i32 = arith.constant 0 : i32
    %c0_i32_0 = arith.constant 0 : i32
    return %c0_i32, %arg0 : i32, i32
  }
  func.func @transform_1(%arg0: i32) -> (i32, i32) {
    %c0_i32 = arith.constant 0 : i32
    %c0_i32_0 = arith.constant 0 : i32
    return %c0_i32, %arg0 : i32, i32
  }
  func.func @transform_2(%arg0: i32) -> (i32, i32) {
    %c0_i32 = arith.constant 0 : i32
    %c0_i32_0 = arith.constant 0 : i32
    return %c0_i32, %arg0 : i32, i32
  }
  func.func @transform_3(%arg0: i32) -> (i32, i32) {
    %c0_i32 = arith.constant 0 : i32
    %c0_i32_0 = arith.constant 0 : i32
    return %c0_i32, %arg0 : i32, i32
  }
  func.func @transform_4(%arg0: i32) -> (i32, i32) {
    %c0_i32 = arith.constant 0 : i32
    %c0_i32_0 = arith.constant 0 : i32
    return %c0_i32, %arg0 : i32, i32
  }
}

</mosaic_0001>

<bundles_post_ra>
// kernel: tpu_custom_call.1
= control target key start
LH: loop header
LB: loop body
LE: loop exit
PB: predicated region body
PF: predicated region fallthrough
CT: control target
= control target key end

     0   :  { %10 = vsyncpa [#allocation3], 0  ;;  %s369_s0 = inlined_call_operand.hbm [shape: f32[9,16], index: 0, kind: input, shape index: {}]   ;;  %s370_s1 = inlined_call_operand.vmem [shape: s32[1,16], index: 1, kind: input, shape index: {}]   ;;  %s371_s2 = inlined_call_operand.hbm [shape: s32[1,16], index: 2, kind: output, shape index: {0}]   ;;  %s372_s3 = inlined_call_operand.hbm [shape: f32[1,128], index: 3, kind: output, shape index: {1}]   ;;  %s373_s4 = inlined_call_operand.hbm [shape: f32[1,128], index: 4, kind: output, shape index: {2}]  }
   0x1   :  { %11 = vsyncpa [#allocation4], 0 }
   0x2   :  { %12 = vsyncpa [#allocation7], 0  ;;  %s265_s15 = smov [#allocation2]   ;;  %s171_s19 = scalar_lea.hbm %s369_s0, 256 }
   0x3   :  { %s18_s16 = sshll.u32 %s265_s15, 4  ;;  %p172_p0 = scmp.ne.s32.totalorder %s369_s0, %s171_s19  ;;  %s19_s16 = int_to_ptr.vmem [resolvable:$true] %s18_s16 }
   0x4   :  { %p175_p1 = scmp.lt.u32.totalorder %s171_s19, %s369_s0 }
   0x6   :  { %p177_p2 = pnand %p175_p1, %p172_p0 }
   0x8   :  { %180 = shalt.err (!%p177_p2)
}
   0x9   :  { %s181_s24 = scalar_lea.vmem %s19_s16, 256  ;;  %p186_p4 = scmp.lt.s32.totalorder %s19_s16, %s19_s16 }
   0xa   :  { %p182_p3 = scmp.ne.s32.totalorder %s19_s16, %s181_s24  ;;  %p187_p5 = scmp.lt.s32.totalorder %s181_s24, %s181_s24 }
   0xc   :  { %p188_p6 = por %p187_p5, %p186_p4 }
   0xe   :  { %p189_p7 = pnand %p188_p6, %p182_p3 }
  0x10   :  { %192 = shalt.err (!%p189_p7)
}
  0x11   :  { %s266_s25 = smov 128   ;;  %s267_s26 = smov 8  }
  0x12   :  { %24 = dma.hbm_to_vmem [thread:$0]  %s369_s0, 256, %s19_s16, [#allocation3], %s266_s25, %s266_s25, %s267_s26  }
  0x13   :  { %259 = dma.done.wait [#allocation3], 256  }
  0x14   :  { %260 = vsyncadd [#allocation3], 4294967040  ;;  %vm36_vm0 = vcmask 1040384   ;;  %v309_v0 = vld [vmem:[#allocation2] sm:$0xff]  ;;  %v31_v1 = vld [vmem:[#allocation2 + $0x8] sm:$0x1]  ;;  %v33_v3 = vlaneseq }
  0x15   :  { %v37_v2 = vsel %vm36_vm0, %v31_v1, -inf  ;;  %v32_v8 = vld [vmem:[%s370_s1] sm:$0x1]  ;;  %v268_v47 = vmov 0.0   ;;  %s269_s0 = smov [#allocation5]  }
  0x16   :  { %v38_v4 = vmax.f32 %v309_v0, %v37_v2  ;;  %v80_v7 = vand.u32 127, %v33_v3  ;;  %vm83_vm1 = vcmp.ne.s32.totalorder %v32_v8, 4294967196  ;;  %v34_v11 = vshrl.u32 %v33_v3, 7  ;;  %s121_s1 = sshll.u32 %s269_s0, 4  ;;  %s122_s1 = int_to_ptr.vmem [resolvable:$true] %s121_s1 }
  0x17   :  { %s193_s5 = scalar_lea.vmem %s122_s1, 16  ;;  %s197_s6 = scalar_lea.vmem %s122_s1, 32 }
  0x18   :  { %v39_v5 = vrot.slane %v38_v4, 4  ;;  %vm84_vm2 = vcmp.lt.s32.totalorder %v80_v7, 16  ;;  %v89_v15 = vsub.s32 0, %v34_v11  ;;  %v35_v21 = vadd.s32 8, %v34_v11  ;;  %p194_p8 = scmp.ne.s32.totalorder %s122_s1, %s193_s5  ;;  %p198_p9 = scmp.lt.s32.totalorder %s122_s1, %s122_s1 }
  0x19   :  { %vm316_vm3 = vmand %vm83_vm1, %vm84_vm2  ;;  %p199_p10 = scmp.lt.s32.totalorder %s197_s6, %s193_s5 }
  0x1a   :  { %v40_v6 = vmax.f32 %v38_v4, %v39_v5  ;;  %v86_v18 = vsel %vm316_vm3, %v32_v8, 0  ;;  %v157_v48 = vsel %vm316_vm3, 1.0, %v268_v47 }
  0x1b   :  { %v90_v22 = vrot.slane %v86_v18, %v89_v15  ;;  %v110_v51 = vsel %vm36_vm0, %v157_v48, 0.0  ;;  %p200_p11 = por %p199_p10, %p198_p9 }
  0x1c   :  { %v41_v9 = vrot.slane %v40_v6, 2 }
  0x1d   :  { %vm92_vm4 = vcmp.eq.s32.totalorder %v35_v21, %v90_v22  ;;  %vm91_vm5 = vcmp.eq.s32.totalorder %v34_v11, %v90_v22  ;;  %p201_p12 = pnand %p200_p11, %p194_p8 }
  0x1e   :  { %v42_v10 = vmax.f32 %v40_v6, %v41_v9 }
  0x20   :  { %v43_v12 = vrot.slane %v42_v10, 1 }
  0x22   :  { %v44_v14 = vmax.f32 %v42_v10, %v43_v12 }
  0x24   :  { %v62_v16 = vsub.f32 %v309_v0, %v44_v14  ;;  %v63_v17 = vsub.f32 %v31_v1, %v44_v14  ;;  %vm46_vm6 = vcmp.eq.f32.partialorder %v31_v1, %v44_v14  ;;  %vm45_vm7 = vcmp.eq.f32.partialorder %v309_v0, %v44_v14 }
  0x25   :  { %v48_v50 = vsel %vm46_vm6, %v35_v21, 9  ;;  %v47_v52 = vsel %vm45_vm7, %v34_v11, 9 }
  0x26   :  { %v64_v19 = vmul.f32 1.442695, %v62_v16  ;;  %v66_v20 = vmul.f32 1.442695, %v63_v17  ;;  %v94_v23 = vsel %vm92_vm4, %v63_v17, 0.0  ;;  %v93_v24 = vsel %vm91_vm5, %v62_v16, 0.0 }
  0x27   :  { %v95_v25 = vsel %vm36_vm0, %v94_v23, 0.0  ;;  %v49_v53 = vsel %vm36_vm0, %v48_v50, 2147483647 }
  0x28   :  { %165 = vpow2.f32 %v64_v19  ;;  %v96_v29 = vadd.f32 %v95_v25, %v93_v24  ;;  %vm50_vm8 = vcmp.lt.s32.totalorder %v47_v52, %v49_v53 }
  0x29   :  { %167 = vpow2.f32 %v66_v20  ;;  %v51_v54 = vsel %vm50_vm8, %v47_v52, %v49_v53 }
  0x2a   :  { %v97_v32 = vrot.slane %v96_v29, 4  ;;  %v52_v55 = vrot.slane %v51_v54, 4 }
  0x2c   :  { %v98_v35 = vadd.f32 %v97_v32, %v96_v29  ;;  %vm53_vm9 = vcmp.lt.s32.totalorder %v51_v54, %v52_v55 }
  0x2d   :  { %v54_v56 = vsel %vm53_vm9, %v51_v54, %v52_v55 }
  0x2e   :  { %v99_v38 = vrot.slane %v98_v35, 2  ;;  %v55_v57 = vrot.slane %v54_v56, 2 }
  0x30   :  { %v100_v40 = vadd.f32 %v99_v38, %v98_v35  ;;  %vm56_vm10 = vcmp.lt.s32.totalorder %v54_v56, %v55_v57 }
  0x31   :  { %v57_v58 = vsel %vm56_vm10, %v54_v56, %v55_v57 }
  0x32   :  { %v166_v26 = vpop.eup %165  ;;  %v101_v41 = vrot.slane %v100_v40, 1  ;;  %v58_v59 = vrot.slane %v57_v58, 1 }
  0x33   :  { %v168_v27 = vpop.eup %167 }
  0x34   :  { %v68_v28 = vsel %vm36_vm0, %v168_v27, 0.0  ;;  %v102_v42 = vadd.f32 %v101_v41, %v100_v40  ;;  %vm59_vm11 = vcmp.lt.s32.totalorder %v57_v58, %v58_v59 }
  0x35   :  { %v69_v30 = vadd.f32 %v166_v26, %v68_v28  ;;  %v60_v60 = vsel %vm59_vm11, %v57_v58, %v58_v59 }
  0x36   :  { %61 = vst [vmem:[#allocation5] sm:$0x1] %v60_v60 }
  0x37   :  { %v70_v31 = vrot.slane %v69_v30, 4 }
  0x39   :  { %v71_v33 = vadd.f32 %v70_v31, %v69_v30 }
  0x3b   :  { %v72_v34 = vrot.slane %v71_v33, 2 }
  0x3d   :  { %v73_v36 = vadd.f32 %v72_v34, %v71_v33 }
  0x3f   :  { %v74_v37 = vrot.slane %v73_v36, 1 }
  0x41   :  { %v75_v39 = vadd.f32 %v74_v37, %v73_v36 }
  0x43   :  { %169 = vlog2.f32 %v75_v39 }
  0x4d   :  { %v170_v43 = vpop.eup %169 }
  0x4e   :  { %v77_v44 = vmul.f32 0.6931472, %v170_v43 }
  0x50   :  { %v103_v45 = vsub.f32 %v77_v44, %v102_v42 }
  0x52   :  { %v104_v46 = vsel %vm316_vm3, %v103_v45, 0.0 }
  0x53   :  { %v105_v49 = vsel %vm36_vm0, %v104_v46, 0.0 }
  0x54   :  { %106 = vadd.xlane.f32.xlu0 %v105_v49 }
  0x58   :  { %111 = vadd.xlane.f32.xlu0 %v110_v51 }
  0x59   :  { %204 = shalt.err (!%p201_p12)
}
  0x5a   :  { %s205_s9 = scalar_lea.hbm %s371_s2, 16 }
  0x5b   :  { %p206_p13 = scmp.ne.s32.totalorder %s371_s2, %s205_s9  ;;  %p209_p0 = scmp.lt.u32.totalorder %s205_s9, %s371_s2 }
  0x5d   :  { %p211_p1 = pnand %p209_p0, %p206_p13 }
  0x5f   :  { %214 = shalt.err (!%p211_p1)
}
  0x60   :  { %124 = dma.vmem_to_hbm [thread:$0]  %s122_s1, 16, %s371_s2, [#allocation4]  }
  0x61   :  { %s270_s16 = smov [#allocation6]   ;;  %s271_s18 = smov [#allocation8]  }
  0x62   :  { %s131_s17 = sshll.u32 %s270_s16, 4  ;;  %s141_s19 = sshll.u32 %s271_s18, 4  ;;  %s132_s17 = int_to_ptr.vmem [resolvable:$true] %s131_s17  ;;  %s142_s19 = int_to_ptr.vmem [resolvable:$true] %s141_s19 }
  0x63   :  { %s215_s20 = scalar_lea.vmem %s132_s17, 16  ;;  %s219_s21 = scalar_lea.vmem %s132_s17, 32 }
  0x64   :  { %p216_p2 = scmp.ne.s32.totalorder %s132_s17, %s215_s20  ;;  %p220_p3 = scmp.lt.s32.totalorder %s132_s17, %s132_s17 }
  0x65   :  { %p221_p4 = scmp.lt.s32.totalorder %s219_s21, %s215_s20 }
  0x67   :  { %p222_p5 = por %p221_p4, %p220_p3 }
  0x69   :  { %p223_p6 = pnand %p222_p5, %p216_p2 }
  0xe1   :  { %v107_v61 = vpop.xlane.xlu0 %106 }
  0xe2   :  { %113 = vst [vmem:[#allocation6] sm:$0x1] %v107_v61 }
  0xe3   :  { %226 = shalt.err (!%p223_p6)
}
  0xe4   :  { %s227_s24 = scalar_lea.hbm %s372_s3, 16 }
  0xe5   :  { %p228_p7 = scmp.ne.s32.totalorder %s372_s3, %s227_s24  ;;  %p231_p8 = scmp.lt.u32.totalorder %s227_s24, %s372_s3 }
  0xe7   :  { %p233_p9 = pnand %p231_p8, %p228_p7 }
  0xe9   :  { %236 = shalt.err (!%p233_p9)
}
  0xea   :  { %134 = dma.vmem_to_hbm [thread:$0]  %s132_s17, 16, %s372_s3, [#allocation7]   ;;  %v112_v62 = vpop.xlane.xlu0 %111 }
  0xeb   :  { %114 = vst [vmem:[#allocation8] sm:$0x1] %v112_v62  ;;  %s237_s30 = scalar_lea.vmem %s142_s19, 16  ;;  %s241_s0 = scalar_lea.vmem %s142_s19, 32 }
  0xec   :  { %p238_p10 = scmp.ne.s32.totalorder %s142_s19, %s237_s30  ;;  %p242_p11 = scmp.lt.s32.totalorder %s142_s19, %s142_s19 }
  0xed   :  { %p243_p12 = scmp.lt.s32.totalorder %s241_s0, %s237_s30 }
  0xef   :  { %p244_p13 = por %p243_p12, %p242_p11 }
  0xf1   :  { %p245_p0 = pnand %p244_p13, %p238_p10 }
  0xf3   :  { %248 = shalt.err (!%p245_p0)
}
  0xf4   :  { %s249_s6 = scalar_lea.hbm %s373_s4, 16 }
  0xf5   :  { %p250_p1 = scmp.ne.s32.totalorder %s373_s4, %s249_s6  ;;  %p253_p2 = scmp.lt.u32.totalorder %s249_s6, %s373_s4 }
  0xf7   :  { %p255_p3 = pnand %p253_p2, %p250_p1 }
  0xf9   :  { %258 = shalt.err (!%p255_p3)
}
  0xfa   :  { %144 = dma.vmem_to_hbm [thread:$0]  %s142_s19, 16, %s373_s4, [#allocation7]  }
  0xfb   :  { %261 = dma.done.wait [#allocation4], 16  }
  0xfc   :  { %262 = vsyncadd [#allocation4], 4294967280 }
  0xfd   :  { %263 = dma.done.wait [#allocation7], 32  }
  0xfe   :  { %264 = vsyncadd [#allocation7], 4294967264 }
  0xff   :  { %154 = vsyncpa [#allocation3], 1 }
 0x100   :  { %155 = vsyncpa [#allocation4], 1 }
 0x101   :  { %156 = vsyncpa [#allocation7], 1 }

</bundles_post_ra>
